<compile_context>
chip_gen: v6e
topology: v6e:2x2x1
jax: 0.10.0
libtpu: 0.0.40
codegen_flags: <defaults>
</compile_context>

<pallas_src>
import functools

import jax
import jax.numpy as jnp
from jax.experimental import pallas as pl
from jax.experimental.pallas import tpu as pltpu

_LANE = 128


def _sam_kernel(x_ref, mask_ref, w_ref, b_ref, out_ref, *, num_heads, batch):
    """Single-step fused MHA + mean-over-batch + fc_out.

    x_ref    : (B*S, E)           bf16
    mask_ref : (H, B*S, B*S)      f32   block-diagonal additive mask (off-batch = -1e30)
    w_ref    : (E, 3*128)         bf16  [in_proj^T | out_proj^T | fc_out^T], each 0-padded to 128 lanes
    b_ref    : (1, 128)           f32   in_proj bias, 0-padded
    out_ref  : (S, 128)           f32   lanes >= out_dim are zero
    """
    H = num_heads
    B = batch
    BS, E = x_ref.shape
    S = BS // B
    dh = E // H
    scale = 1.0 / (dh ** 0.5)

    w = w_ref[...]                                   # (E, 384) bf16
    w_in_t = w[:, 0:_LANE]                           # lanes 0:3E = in_proj_weight^T
    wo_t = w[:, _LANE:2 * _LANE]                     # lanes 0:E  = out_proj.weight^T
    wfc_t = w[:, 2 * _LANE:3 * _LANE]                # lanes 0:OUT = fc_out.weight^T

    # Fused QKV projection: one bf16 matmul, f32 accumulation, lane-padded bias add.
    qkv = jnp.dot(x_ref[...], w_in_t, preferred_element_type=jnp.float32)
    qkv = qkv + b_ref[...]                           # (B*S, 128); lanes 0:3E valid

    # Hoisted Q/K/V splits + bf16 casts (3 casts total, not 3 per head).
    q = qkv[:, 0:E].astype(jnp.bfloat16)             # (B*S, E)
    k = qkv[:, E:2 * E].astype(jnp.bfloat16)
    v = qkv[:, 2 * E:3 * E].astype(jnp.bfloat16)

    heads = []
    for h in range(H):                               # static unroll (H=4)
        lo = h * dh
        qh = q[:, lo:lo + dh]                        # (B*S, dh)
        kh = k[:, lo:lo + dh]
        vh = v[:, lo:lo + dh]

        # Batch fused via block-diagonal mask: one (B*S, B*S) score matmul per head.
        s = jnp.einsum('qd,kd->qk', qh, kh,
                       preferred_element_type=jnp.float32)
        s = s * scale + mask_ref[h]                  # off-batch blocks ~ -1e30
        m = jnp.max(s, axis=-1, keepdims=True)       # finite (own-batch block finite)
        p = jnp.exp(s - m)                           # off-batch entries underflow to 0
        p = p * pl.reciprocal(jnp.sum(p, axis=-1, keepdims=True), approx=True)

        ctx = jnp.dot(p.astype(jnp.bfloat16), vh,
                      preferred_element_type=jnp.float32)       # (B*S, dh)
        # Mean over batch (rows are batch-major blocks of S); commutes with out_proj.
        heads.append(jnp.mean(ctx.reshape(B, S, dh), axis=0))   # (S, dh)

    # Lane-concat the heads -> single out_proj matmul (replaces 4 partial matmuls).
    ctx_mean = jnp.concatenate(heads, axis=-1).astype(jnp.bfloat16)        # (S, E)
    attn_mean = jnp.dot(ctx_mean, wo_t, preferred_element_type=jnp.float32)  # (S, 128)

    # fc_out (no bias; out_proj bias folded through fc_out on the wrapper).
    out_ref[...] = jnp.dot(attn_mean[:, 0:E].astype(jnp.bfloat16), wfc_t,
                           preferred_element_type=jnp.float32)             # (S, 128)


@functools.partial(jax.jit, static_argnames=("num_heads",))
def self_attention_model(x, mask, w_in, b_in, wo, bo, wfc, *, num_heads):
    B, S, E = x.shape
    H = num_heads
    out_dim = wfc.shape[0]
    dh = E // H
    assert 3 * E <= _LANE and out_dim <= _LANE

    # ---- wrapper-side layout prep (cheap XLA ops, fused with surrounding graph) ----
    x2d = x.reshape(B * S, E).astype(jnp.bfloat16)

    # PyTorch 3-D attn_mask index is b*H + h -> (B, H, S, S).  Build a per-head
    # block-diagonal-over-batch additive mask (H, B*S, B*S): own-batch (S,S) blocks
    # on the diagonal, -1e30 off the diagonal, so each head's batched score einsum
    # collapses into a single MXU matmul in the kernel.
    mask_hb = mask.reshape(B, H, S, S).transpose(1, 0, 2, 3).astype(jnp.float32)
    same_batch = jnp.eye(B, dtype=bool)[:, None, :, None]               # (B,1,B,1)
    mask_block = jnp.where(same_batch, mask_hb[:, :, :, None, :],
                           jnp.float32(-1e30))                          # (H,B,S,B,S)
    mask_block = mask_block.reshape(H, B * S, B * S)

    # Pack the three bf16 weight slabs into one lane-padded buffer (one DMA).
    def _pad_lanes(a):
        return jnp.pad(a, ((0, 0), (0, _LANE - a.shape[1])))
    w_packed = jnp.concatenate(
        [_pad_lanes(w_in.T.astype(jnp.bfloat16)),      # (E, 3E) -> (E, 128)
         _pad_lanes(wo.T.astype(jnp.bfloat16)),        # (E, E)  -> (E, 128)
         _pad_lanes(wfc.T.astype(jnp.bfloat16))],      # (E, OUT)-> (E, 128)
        axis=-1)                                       # (E, 384)

    b_in_pad = jnp.pad(b_in.astype(jnp.float32),
                       (0, _LANE - 3 * E)).reshape(1, _LANE)

    # out_proj bias folded through fc_out (exact: everything after bo is linear).
    bias_out = bo.astype(jnp.float32) @ wfc.T.astype(jnp.float32)       # (out_dim,)

    # Advisory cost estimate so XLA can schedule around this tiny opaque call.
    flops = 2 * (B * S * E * _LANE                    # fused QKV projection (padded)
                 + H * 2 * (B * S) * (B * S) * dh     # per-head scores + ctx
                 + S * E * _LANE                      # out_proj (padded)
                 + S * E * _LANE)                     # fc_out (padded)
    bytes_accessed = (x2d.size * 2 + mask_block.size * 4 + w_packed.size * 2
                      + b_in_pad.size * 4 + S * _LANE * 4)
    transcendentals = H * (B * S) * (B * S)

    kernel = functools.partial(_sam_kernel, num_heads=H, batch=B)
    vmem = pl.BlockSpec(memory_space=pltpu.MemorySpace.VMEM)
    out_pad = pl.pallas_call(
        kernel,
        out_shape=jax.ShapeDtypeStruct((S, _LANE), jnp.float32),
        in_specs=[vmem] * 4,
        out_specs=vmem,
        cost_estimate=pl.CostEstimate(flops=flops,
                                      transcendentals=transcendentals,
                                      bytes_accessed=bytes_accessed),
    )(x2d, mask_block, w_packed, b_in_pad)

    return out_pad[:, :out_dim] + bias_out[None, :]


def reference(x, mask, w_in, b_in, wo, bo, wfc, num_heads):
    """Pure-JAX f32 reference (mirrors nn.MultiheadAttention, batch_first=True)."""
    B, S, E = x.shape
    dh = E // num_heads
    qkv = x @ w_in.T + b_in                                   # (B, S, 3E)
    q, k, v = jnp.split(qkv, 3, axis=-1)

    def split_heads(t):
        return t.reshape(B, S, num_heads, dh).transpose(0, 2, 1, 3)   # (B, H, S, dh)

    q, k, v = split_heads(q), split_heads(k), split_heads(v)
    scores = jnp.einsum("bhqd,bhkd->bhqk", q, k) / (dh ** 0.5)
    scores = scores + mask.reshape(B, num_heads, S, S)
    p = jax.nn.softmax(scores, axis=-1)
    o = jnp.einsum("bhqk,bhkd->bhqd", p, v).transpose(0, 2, 1, 3).reshape(B, S, E)
    o = o @ wo.T + bo
    m = o.mean(axis=0)                                        # mean over dim 0
    return m @ wfc.T


if __name__ == "__main__":
    # Config: input_dim=32, num_heads=4, hidden_dims=[32], out_dim=8.
    B, S, E, H, OUT = 2, 8, 32, 4, 8

    key = jax.random.PRNGKey(0)
    kx, km, k1, k2, k3, k4, k5 = jax.random.split(key, 7)

    x = jax.random.normal(kx, (B, S, E), dtype=jnp.float32)
    # additive attention mask, PyTorch 3-D attn_mask shape (B * num_heads, S, S)
    mask = 0.5 * jax.random.normal(km, (B * H, S, S), dtype=jnp.float32)

    # Deterministic parameter init (synthetic, not a checkpoint).
    w_in = 0.1 * jax.random.normal(k1, (3 * E, E), dtype=jnp.float32)   # in_proj_weight
    b_in = 0.1 * jax.random.normal(k2, (3 * E,), dtype=jnp.float32)     # in_proj_bias
    wo = 0.1 * jax.random.normal(k3, (E, E), dtype=jnp.float32)         # out_proj.weight
    bo = 0.1 * jax.random.normal(k4, (E,), dtype=jnp.float32)           # out_proj.bias
    wfc = 0.1 * jax.random.normal(k5, (OUT, E), dtype=jnp.float32)      # fc_out.weight

    out = self_attention_model(x, mask, w_in, b_in, wo, bo, wfc, num_heads=H)
    out = jax.block_until_ready(out)

    ref = reference(x, mask, w_in, b_in, wo, bo, wfc, H)
    assert out.shape == (S, OUT), out.shape
    assert bool(jnp.all(jnp.isfinite(out)))
    # bf16 MXU operands with f32 accumulation vs. f32 reference.
    assert bool(jnp.allclose(out, ref, rtol=2e-2, atol=2e-2)), (out, ref)

    print("KERNEL_OK")
</pallas_src>

<mosaic_0001>
module attributes {stable_mosaic.version = 11 : i64} {
  func.func @_sam_kernel(%arg0: memref<16x32xbf16, #tpu.memory_space<vmem>>, %arg1: memref<4x16x16xf32, #tpu.memory_space<vmem>>, %arg2: memref<32x384xbf16, #tpu.memory_space<vmem>>, %arg3: memref<1x128xf32, #tpu.memory_space<vmem>>, %arg4: memref<8x128xf32, #tpu.memory_space<vmem>>) attributes {dimension_semantics = [], scalar_prefetch = 0 : i64, scratch_operands = 0 : i64, tpu.core_type = #tpu.core_type<tc>} {
    %c0 = arith.constant 0 : index
    %c0_0 = arith.constant 0 : index
    %0 = vector.load %arg2[%c0, %c0_0] : memref<32x384xbf16, #tpu.memory_space<vmem>>, vector<32x384xbf16>
    %1 = vector.extract_strided_slice %0 {offsets = [0, 0], sizes = [32, 128], strides = [1, 1]} : vector<32x384xbf16> to vector<32x128xbf16>
    %2 = vector.extract_strided_slice %0 {offsets = [0, 128], sizes = [32, 128], strides = [1, 1]} : vector<32x384xbf16> to vector<32x128xbf16>
    %3 = vector.extract_strided_slice %0 {offsets = [0, 256], sizes = [32, 128], strides = [1, 1]} : vector<32x384xbf16> to vector<32x128xbf16>
    %c0_1 = arith.constant 0 : index
    %c0_2 = arith.constant 0 : index
    %4 = vector.load %arg0[%c0_1, %c0_2] : memref<16x32xbf16, #tpu.memory_space<vmem>>, vector<16x32xbf16>
    %cst = arith.constant dense<0.000000e+00> : vector<16x128xf32>
    %5 = tpu.matmul %4, %1, %cst {dimension_numbers = #tpu.dot_dimension_numbers<[1], [0], [0], [1], [0, 0, 1, 1], [], []>} : vector<16x32xbf16>, vector<32x128xbf16>, vector<16x128xf32> -> vector<16x128xf32>
    %c0_3 = arith.constant 0 : index
    %c0_4 = arith.constant 0 : index
    %6 = vector.load %arg3[%c0_3, %c0_4] : memref<1x128xf32, #tpu.memory_space<vmem>>, vector<1x128xf32>
    %7 = vector.broadcast %6 : vector<1x128xf32> to vector<16x128xf32>
    %8 = arith.addf %5, %7 : vector<16x128xf32>
    %9 = vector.extract_strided_slice %8 {offsets = [0, 0], sizes = [16, 32], strides = [1, 1]} : vector<16x128xf32> to vector<16x32xf32>
    %10 = arith.truncf %9 : vector<16x32xf32> to vector<16x32xbf16>
    %11 = vector.extract_strided_slice %8 {offsets = [0, 32], sizes = [16, 32], strides = [1, 1]} : vector<16x128xf32> to vector<16x32xf32>
    %12 = arith.truncf %11 : vector<16x32xf32> to vector<16x32xbf16>
    %13 = vector.extract_strided_slice %8 {offsets = [0, 64], sizes = [16, 32], strides = [1, 1]} : vector<16x128xf32> to vector<16x32xf32>
    %14 = arith.truncf %13 : vector<16x32xf32> to vector<16x32xbf16>
    %15 = vector.extract_strided_slice %10 {offsets = [0, 0], sizes = [16, 8], strides = [1, 1]} : vector<16x32xbf16> to vector<16x8xbf16>
    %16 = vector.extract_strided_slice %12 {offsets = [0, 0], sizes = [16, 8], strides = [1, 1]} : vector<16x32xbf16> to vector<16x8xbf16>
    %17 = vector.extract_strided_slice %14 {offsets = [0, 0], sizes = [16, 8], strides = [1, 1]} : vector<16x32xbf16> to vector<16x8xbf16>
    "tpu.trace_start"() <{level = 10 : i32, message = "qd,kd->qk"}> : () -> ()
    %cst_5 = arith.constant dense<0.000000e+00> : vector<16x16xf32>
    %18 = tpu.matmul %15, %16, %cst_5 {dimension_numbers = #tpu.dot_dimension_numbers<[1], [1], [0], [0], [0, 0, 1, 0], [], []>} : vector<16x8xbf16>, vector<16x8xbf16>, vector<16x16xf32> -> vector<16x16xf32>
    "tpu.trace_stop"() : () -> ()
    %cst_6 = arith.constant 0.353553385 : f32
    %19 = vector.broadcast %cst_6 : f32 to vector<16x16xf32>
    %20 = arith.mulf %18, %19 : vector<16x16xf32>
    %c0_7 = arith.constant 0 : index
    %c0_8 = arith.constant 0 : index
    %c0_9 = arith.constant 0 : index
    %21 = vector.load %arg1[%c0_7, %c0_8, %c0_9] : memref<4x16x16xf32, #tpu.memory_space<vmem>>, vector<1x16x16xf32>
    %22 = vector.shape_cast %21 : vector<1x16x16xf32> to vector<16x16xf32>
    %23 = arith.addf %20, %22 : vector<16x16xf32>
    %cst_10 = arith.constant dense<0xFF800000> : vector<16xf32>
    %24 = vector.multi_reduction <maximumf>, %23, %cst_10 [1] : vector<16x16xf32> to vector<16xf32>
    %25 = vector.shape_cast %24 : vector<16xf32> to vector<16x1xf32>
    %26 = vector.broadcast %25 : vector<16x1xf32> to vector<16x16xf32>
    %27 = arith.subf %23, %26 : vector<16x16xf32>
    %28 = math.exp %27 : vector<16x16xf32>
    %cst_11 = arith.constant dense<0.000000e+00> : vector<16xf32>
    %29 = vector.multi_reduction <add>, %28, %cst_11 [1] : vector<16x16xf32> to vector<16xf32>
    %30 = vector.shape_cast %29 : vector<16xf32> to vector<16x1xf32>
    %31 = tpu.reciprocal %30 {approx = true} : vector<16x1xf32> -> vector<16x1xf32>
    %32 = vector.broadcast %31 : vector<16x1xf32> to vector<16x16xf32>
    %33 = arith.mulf %28, %32 : vector<16x16xf32>
    %34 = arith.truncf %33 : vector<16x16xf32> to vector<16x16xbf16>
    %cst_12 = arith.constant dense<0.000000e+00> : vector<16x8xf32>
    %35 = tpu.matmul %34, %17, %cst_12 {dimension_numbers = #tpu.dot_dimension_numbers<[1], [0], [0], [1], [0, 0, 1, 1], [], []>} : vector<16x16xbf16>, vector<16x8xbf16>, vector<16x8xf32> -> vector<16x8xf32>
    %36 = vector.shape_cast %35 : vector<16x8xf32> to vector<2x8x8xf32>
    %cst_13 = arith.constant dense<0.000000e+00> : vector<8x8xf32>
    %37 = vector.multi_reduction <add>, %36, %cst_13 [0] : vector<2x8x8xf32> to vector<8x8xf32>
    %cst_14 = arith.constant 2.000000e+00 : f32
    %38 = vector.broadcast %cst_14 : f32 to vector<8x8xf32>
    %39 = arith.divf %37, %38 : vector<8x8xf32>
    %40 = vector.extract_strided_slice %10 {offsets = [0, 8], sizes = [16, 8], strides = [1, 1]} : vector<16x32xbf16> to vector<16x8xbf16>
    %41 = vector.extract_strided_slice %12 {offsets = [0, 8], sizes = [16, 8], strides = [1, 1]} : vector<16x32xbf16> to vector<16x8xbf16>
    %42 = vector.extract_strided_slice %14 {offsets = [0, 8], sizes = [16, 8], strides = [1, 1]} : vector<16x32xbf16> to vector<16x8xbf16>
    "tpu.trace_start"() <{level = 10 : i32, message = "qd,kd->qk"}> : () -> ()
    %cst_15 = arith.constant dense<0.000000e+00> : vector<16x16xf32>
    %43 = tpu.matmul %40, %41, %cst_15 {dimension_numbers = #tpu.dot_dimension_numbers<[1], [1], [0], [0], [0, 0, 1, 0], [], []>} : vector<16x8xbf16>, vector<16x8xbf16>, vector<16x16xf32> -> vector<16x16xf32>
    "tpu.trace_stop"() : () -> ()
    %cst_16 = arith.constant 0.353553385 : f32
    %44 = vector.broadcast %cst_16 : f32 to vector<16x16xf32>
    %45 = arith.mulf %43, %44 : vector<16x16xf32>
    %c1 = arith.constant 1 : index
    %c0_17 = arith.constant 0 : index
    %c0_18 = arith.constant 0 : index
    %46 = vector.load %arg1[%c1, %c0_17, %c0_18] : memref<4x16x16xf32, #tpu.memory_space<vmem>>, vector<1x16x16xf32>
    %47 = vector.shape_cast %46 : vector<1x16x16xf32> to vector<16x16xf32>
    %48 = arith.addf %45, %47 : vector<16x16xf32>
    %cst_19 = arith.constant dense<0xFF800000> : vector<16xf32>
    %49 = vector.multi_reduction <maximumf>, %48, %cst_19 [1] : vector<16x16xf32> to vector<16xf32>
    %50 = vector.shape_cast %49 : vector<16xf32> to vector<16x1xf32>
    %51 = vector.broadcast %50 : vector<16x1xf32> to vector<16x16xf32>
    %52 = arith.subf %48, %51 : vector<16x16xf32>
    %53 = math.exp %52 : vector<16x16xf32>
    %cst_20 = arith.constant dense<0.000000e+00> : vector<16xf32>
    %54 = vector.multi_reduction <add>, %53, %cst_20 [1] : vector<16x16xf32> to vector<16xf32>
    %55 = vector.shape_cast %54 : vector<16xf32> to vector<16x1xf32>
    %56 = tpu.reciprocal %55 {approx = true} : vector<16x1xf32> -> vector<16x1xf32>
    %57 = vector.broadcast %56 : vector<16x1xf32> to vector<16x16xf32>
    %58 = arith.mulf %53, %57 : vector<16x16xf32>
    %59 = arith.truncf %58 : vector<16x16xf32> to vector<16x16xbf16>
    %cst_21 = arith.constant dense<0.000000e+00> : vector<16x8xf32>
    %60 = tpu.matmul %59, %42, %cst_21 {dimension_numbers = #tpu.dot_dimension_numbers<[1], [0], [0], [1], [0, 0, 1, 1], [], []>} : vector<16x16xbf16>, vector<16x8xbf16>, vector<16x8xf32> -> vector<16x8xf32>
    %61 = vector.shape_cast %60 : vector<16x8xf32> to vector<2x8x8xf32>
    %cst_22 = arith.constant dense<0.000000e+00> : vector<8x8xf32>
    %62 = vector.multi_reduction <add>, %61, %cst_22 [0] : vector<2x8x8xf32> to vector<8x8xf32>
    %cst_23 = arith.constant 2.000000e+00 : f32
    %63 = vector.broadcast %cst_23 : f32 to vector<8x8xf32>
    %64 = arith.divf %62, %63 : vector<8x8xf32>
    %65 = vector.extract_strided_slice %10 {offsets = [0, 16], sizes = [16, 8], strides = [1, 1]} : vector<16x32xbf16> to vector<16x8xbf16>
    %66 = vector.extract_strided_slice %12 {offsets = [0, 16], sizes = [16, 8], strides = [1, 1]} : vector<16x32xbf16> to vector<16x8xbf16>
    %67 = vector.extract_strided_slice %14 {offsets = [0, 16], sizes = [16, 8], strides = [1, 1]} : vector<16x32xbf16> to vector<16x8xbf16>
    "tpu.trace_start"() <{level = 10 : i32, message = "qd,kd->qk"}> : () -> ()
    %cst_24 = arith.constant dense<0.000000e+00> : vector<16x16xf32>
    %68 = tpu.matmul %65, %66, %cst_24 {dimension_numbers = #tpu.dot_dimension_numbers<[1], [1], [0], [0], [0, 0, 1, 0], [], []>} : vector<16x8xbf16>, vector<16x8xbf16>, vector<16x16xf32> -> vector<16x16xf32>
    "tpu.trace_stop"() : () -> ()
    %cst_25 = arith.constant 0.353553385 : f32
    %69 = vector.broadcast %cst_25 : f32 to vector<16x16xf32>
    %70 = arith.mulf %68, %69 : vector<16x16xf32>
    %c2 = arith.constant 2 : index
    %c0_26 = arith.constant 0 : index
    %c0_27 = arith.constant 0 : index
    %71 = vector.load %arg1[%c2, %c0_26, %c0_27] : memref<4x16x16xf32, #tpu.memory_space<vmem>>, vector<1x16x16xf32>
    %72 = vector.shape_cast %71 : vector<1x16x16xf32> to vector<16x16xf32>
    %73 = arith.addf %70, %72 : vector<16x16xf32>
    %cst_28 = arith.constant dense<0xFF800000> : vector<16xf32>
    %74 = vector.multi_reduction <maximumf>, %73, %cst_28 [1] : vector<16x16xf32> to vector<16xf32>
    %75 = vector.shape_cast %74 : vector<16xf32> to vector<16x1xf32>
    %76 = vector.broadcast %75 : vector<16x1xf32> to vector<16x16xf32>
    %77 = arith.subf %73, %76 : vector<16x16xf32>
    %78 = math.exp %77 : vector<16x16xf32>
    %cst_29 = arith.constant dense<0.000000e+00> : vector<16xf32>
    %79 = vector.multi_reduction <add>, %78, %cst_29 [1] : vector<16x16xf32> to vector<16xf32>
    %80 = vector.shape_cast %79 : vector<16xf32> to vector<16x1xf32>
    %81 = tpu.reciprocal %80 {approx = true} : vector<16x1xf32> -> vector<16x1xf32>
    %82 = vector.broadcast %81 : vector<16x1xf32> to vector<16x16xf32>
    %83 = arith.mulf %78, %82 : vector<16x16xf32>
    %84 = arith.truncf %83 : vector<16x16xf32> to vector<16x16xbf16>
    %cst_30 = arith.constant dense<0.000000e+00> : vector<16x8xf32>
    %85 = tpu.matmul %84, %67, %cst_30 {dimension_numbers = #tpu.dot_dimension_numbers<[1], [0], [0], [1], [0, 0, 1, 1], [], []>} : vector<16x16xbf16>, vector<16x8xbf16>, vector<16x8xf32> -> vector<16x8xf32>
    %86 = vector.shape_cast %85 : vector<16x8xf32> to vector<2x8x8xf32>
    %cst_31 = arith.constant dense<0.000000e+00> : vector<8x8xf32>
    %87 = vector.multi_reduction <add>, %86, %cst_31 [0] : vector<2x8x8xf32> to vector<8x8xf32>
    %cst_32 = arith.constant 2.000000e+00 : f32
    %88 = vector.broadcast %cst_32 : f32 to vector<8x8xf32>
    %89 = arith.divf %87, %88 : vector<8x8xf32>
    %90 = vector.extract_strided_slice %10 {offsets = [0, 24], sizes = [16, 8], strides = [1, 1]} : vector<16x32xbf16> to vector<16x8xbf16>
    %91 = vector.extract_strided_slice %12 {offsets = [0, 24], sizes = [16, 8], strides = [1, 1]} : vector<16x32xbf16> to vector<16x8xbf16>
    %92 = vector.extract_strided_slice %14 {offsets = [0, 24], sizes = [16, 8], strides = [1, 1]} : vector<16x32xbf16> to vector<16x8xbf16>
    "tpu.trace_start"() <{level = 10 : i32, message = "qd,kd->qk"}> : () -> ()
    %cst_33 = arith.constant dense<0.000000e+00> : vector<16x16xf32>
    %93 = tpu.matmul %90, %91, %cst_33 {dimension_numbers = #tpu.dot_dimension_numbers<[1], [1], [0], [0], [0, 0, 1, 0], [], []>} : vector<16x8xbf16>, vector<16x8xbf16>, vector<16x16xf32> -> vector<16x16xf32>
    "tpu.trace_stop"() : () -> ()
    %cst_34 = arith.constant 0.353553385 : f32
    %94 = vector.broadcast %cst_34 : f32 to vector<16x16xf32>
    %95 = arith.mulf %93, %94 : vector<16x16xf32>
    %c3 = arith.constant 3 : index
    %c0_35 = arith.constant 0 : index
    %c0_36 = arith.constant 0 : index
    %96 = vector.load %arg1[%c3, %c0_35, %c0_36] : memref<4x16x16xf32, #tpu.memory_space<vmem>>, vector<1x16x16xf32>
    %97 = vector.shape_cast %96 : vector<1x16x16xf32> to vector<16x16xf32>
    %98 = arith.addf %95, %97 : vector<16x16xf32>
    %cst_37 = arith.constant dense<0xFF800000> : vector<16xf32>
    %99 = vector.multi_reduction <maximumf>, %98, %cst_37 [1] : vector<16x16xf32> to vector<16xf32>
    %100 = vector.shape_cast %99 : vector<16xf32> to vector<16x1xf32>
    %101 = vector.broadcast %100 : vector<16x1xf32> to vector<16x16xf32>
    %102 = arith.subf %98, %101 : vector<16x16xf32>
    %103 = math.exp %102 : vector<16x16xf32>
    %cst_38 = arith.constant dense<0.000000e+00> : vector<16xf32>
    %104 = vector.multi_reduction <add>, %103, %cst_38 [1] : vector<16x16xf32> to vector<16xf32>
    %105 = vector.shape_cast %104 : vector<16xf32> to vector<16x1xf32>
    %106 = tpu.reciprocal %105 {approx = true} : vector<16x1xf32> -> vector<16x1xf32>
    %107 = vector.broadcast %106 : vector<16x1xf32> to vector<16x16xf32>
    %108 = arith.mulf %103, %107 : vector<16x16xf32>
    %109 = arith.truncf %108 : vector<16x16xf32> to vector<16x16xbf16>
    %cst_39 = arith.constant dense<0.000000e+00> : vector<16x8xf32>
    %110 = tpu.matmul %109, %92, %cst_39 {dimension_numbers = #tpu.dot_dimension_numbers<[1], [0], [0], [1], [0, 0, 1, 1], [], []>} : vector<16x16xbf16>, vector<16x8xbf16>, vector<16x8xf32> -> vector<16x8xf32>
    %111 = vector.shape_cast %110 : vector<16x8xf32> to vector<2x8x8xf32>
    %cst_40 = arith.constant dense<0.000000e+00> : vector<8x8xf32>
    %112 = vector.multi_reduction <add>, %111, %cst_40 [0] : vector<2x8x8xf32> to vector<8x8xf32>
    %cst_41 = arith.constant 2.000000e+00 : f32
    %113 = vector.broadcast %cst_41 : f32 to vector<8x8xf32>
    %114 = arith.divf %112, %113 : vector<8x8xf32>
    %115 = tpu.concatenate %39, %64, %89, %114 in 1 : vector<8x8xf32>, vector<8x8xf32>, vector<8x8xf32>, vector<8x8xf32> -> vector<8x32xf32>
    %116 = arith.truncf %115 : vector<8x32xf32> to vector<8x32xbf16>
    %cst_42 = arith.constant dense<0.000000e+00> : vector<8x128xf32>
    %117 = tpu.matmul %116, %2, %cst_42 {dimension_numbers = #tpu.dot_dimension_numbers<[1], [0], [0], [1], [0, 0, 1, 1], [], []>} : vector<8x32xbf16>, vector<32x128xbf16>, vector<8x128xf32> -> vector<8x128xf32>
    %118 = vector.extract_strided_slice %117 {offsets = [0, 0], sizes = [8, 32], strides = [1, 1]} : vector<8x128xf32> to vector<8x32xf32>
    %119 = arith.truncf %118 : vector<8x32xf32> to vector<8x32xbf16>
    %cst_43 = arith.constant dense<0.000000e+00> : vector<8x128xf32>
    %120 = tpu.matmul %119, %3, %cst_43 {dimension_numbers = #tpu.dot_dimension_numbers<[1], [0], [0], [1], [0, 0, 1, 1], [], []>} : vector<8x32xbf16>, vector<32x128xbf16>, vector<8x128xf32> -> vector<8x128xf32>
    %c0_44 = arith.constant 0 : index
    %c0_45 = arith.constant 0 : index
    %121 = vector.load %arg4[%c0_44, %c0_45] : memref<8x128xf32, #tpu.memory_space<vmem>>, vector<8x128xf32>
    tpu.vector_store %arg4[%c0_44, %c0_45], %120 {strides = array<i32>} : memref<8x128xf32, #tpu.memory_space<vmem>>, vector<8x128xf32>,
    return
  }
}

</mosaic_0001>

<bundles_post_ra>
// kernel: self_attention_model.1
= control target key start
LH: loop header
LB: loop body
LE: loop exit
PB: predicated region body
PF: predicated region fallthrough
CT: control target
= control target key end

     0   :  { %v935_v0 = vmov 0.0   ;;  %vm936_vm0 = vmmov 0   ;;  %vm52_vm1 = vcmask 261120   ;;  %s938_s23 = smov 96   ;;  %s939_s24 = smov 80   ;;  %vm101_vm2 = vcmask 64512   ;;  %s1126_s2 = inlined_call_operand.vmem [shape: bf16[32,384], index: 2, kind: input, shape index: {}]   ;;  %s1127_s0 = inlined_call_operand.vmem [shape: bf16[16,32], index: 0, kind: input, shape index: {}]   ;;  %s1128_s3 = inlined_call_operand.vmem [shape: f32[1,128], index: 3, kind: input, shape index: {}]   ;;  %s1129_s1 = inlined_call_operand.vmem [shape: f32[4,16,16], index: 1, kind: input, shape index: {}]   ;;  %s1130_s4 = inlined_call_operand.vmem [shape: f32[8,128], index: 4, kind: output, shape index: {}]  }
   0x1   :  { %806 = vmatprep.subr.bf16.mxu0 %v935_v0  ;;  %v894_v1 = vld [vmem:[%s1126_s2 + $0x18] ss:$12 sps:$4 sm:$0xff]   ;;  %810 = vmatprep.mubr.msk.bf16.mxu0 %vm936_vm0, %v935_v0  ;;  %v897_v2 = vld [vmem:[%s1126_s2] ss:$12 sps:$4 sm:$0xff]   ;;  %s940_s25 = smov 88   ;;  %s942_s26 = smov 112  }
   0x2   :  { %814 = vmatprep.subr.bf16.mxu1 %v935_v0  ;;  %816 = vmatprep.mubr.msk.bf16.mxu1 %vm936_vm0, %v935_v0  ;;  %v900_v3 = vld [vmem:[%s1127_s0] sm:$0xff]   ;;  %s937_s0 = smov 120   ;;  %s943_s27 = smov 104   ;;  %v896_v22 = vld [vmem:[%s1126_s2 + $0x1c] ss:$12 sps:$4 sm:$0xff]   ;;  %vm155_vm3 = vcmask 130048  }
   0x3   :  { %807 = vmatpush3.bf16.msra.mxu0 %v894_v1  ;;  %v756_v5 = vld [vmem:[%s1128_s3] ss:$0 sm:$0xff]  ;;  %s941_s3 = smov 72   ;;  %v899_v24 = vld [vmem:[%s1126_s2 + $0x4] ss:$12 sps:$4 sm:$0xff]   ;;  %v152_v31 = vld [vmem:[%s1129_s1 + $0x8] sm:$0xff] }
   0x4   :  { %808 = vmatprep.subr.bf16.mxu0 %v935_v0  ;;  %v151_v26 = vld [vmem:[%s1129_s1] sm:$0xff]  ;;  %v764_v37 = vld [vmem:[%s1129_s1 + $0x10] sm:$0xff]  ;;  %v765_v43 = vld [vmem:[%s1129_s1 + $0x18] sm:$0xff]  ;;  %s945_s22 = smov 64   ;;  %s950_s29 = smov 24   ;;  %vm641_vm4 = vcmask 195584  }
   0x5   :  { %v768_v49 = vld [vmem:[%s1129_s1 + $0x20] sm:$0xff]  ;;  %v769_v55 = vld [vmem:[%s1129_s1 + $0x28] sm:$0xff]  ;;  %v772_v61 = vld [vmem:[%s1129_s1 + $0x30] sm:$0xff] }
   0x7   :  { %809 = vmatpush3.bf16.msra.mxu0 %v897_v2 }
   0x8   :  { %820 = vmatprep.subr.bf16.mxu0 %v935_v0 }
   0xa   :  { %811 = vmatmul.mubr.msk.bf16.vlgmr.msra.gmra.mxu0 %vm52_vm1, %v900_v3 }
   0xb   :  { %822 = vmatprep.mubr.msk.bf16.mxu0 %vm936_vm0, %v935_v0 }
  0xca   :  { %v90_v4 = vpop.f32.mrf.mxu0 }
  0xcb   :  { %v91_v8 = vadd.f32 %v756_v5, %v90_v4  ;;  %v773_v4 = vld [vmem:[%s1129_s1 + $0x38] sm:$0xff]  ;;  %s944_s1 = smov 56  }
  0xcc   :  { %v812_v6 = vpop.f32.mrf.mxu0 }
  0xce   :  { %v93_v7 = vpop.f32.mrf.mxu0 }
  0xcf   :  { %v94_v9 = vadd.f32 %v756_v5, %v93_v7 }
  0xd0   :  { %v813_v10 = vpop.f32.mrf.mxu0 }
  0xd1   :  { %v999_v11 = vpack.c.bf16 %v94_v9, %v91_v8 }
  0xd3   :  { %231 = vrot.lane.b32.xlu1 %v999_v11, %s937_s0  ;;  %99 = vrot.lane.b32.xlu0 %v999_v11, %s938_s23  ;;  %s946_s0 = smov 48   ;;  %s947_s23 = smov 40  }
  0xd7   :  { %365 = vrot.lane.b32.xlu1 %v999_v11, %s939_s24  ;;  %233 = vrot.lane.b32.xlu0 %v999_v11, %s940_s25  ;;  %s948_s24 = smov 8  }
  0xdb   :  { %497 = vrot.lane.b32.xlu1 %v999_v11, %s941_s3  ;;  %363 = vrot.lane.b32.xlu0 %v999_v11, %s942_s26  ;;  %s949_s26 = smov 16  }
  0xdf   :  { %495 = vrot.lane.b32.xlu0 %v999_v11, %s943_s27 }
 0x145   :  { %v100_v12 = vpop.permute.xlu0 %99  ;;  %v232_v15 = vpop.permute.xlu1 %231 }
 0x146   :  { %v106_v13 = vsel %vm101_vm2, %v100_v12, 0 }
 0x147   :  { %815 = vmatpush3.bf16.xpose.msra.mxu1 %v106_v13 }
 0x148   :  { %826 = vmatprep.subr.bf16.mxu1 %v935_v0 }
 0x149   :  { %v234_v14 = vpop.permute.xlu0 %233  ;;  %v366_v17 = vpop.permute.xlu1 %365 }
 0x14a   :  { %v239_v16 = vsel %vm101_vm2, %v234_v14, 0  ;;  %v371_v18 = vsel %vm101_vm2, %v366_v17, 0 }
 0x14d   :  { %v498_v19 = vpop.permute.xlu1 %497  ;;  %v364_v20 = vpop.permute.xlu0 %363 }
 0x14e   :  { %817 = vmatmul.mubr.msk.bf16.vlgmr.msra.gmra.mxu1 %vm101_vm2, %v999_v11  ;;  %v503_v21 = vsel %vm101_vm2, %v498_v19, 0 }
 0x14f   :  { %827 = vmatpush3.bf16.xpose.msra.mxu1 %v239_v16  ;;  %828 = vmatprep.mubr.msk.bf16.mxu1 %vm936_vm0, %v935_v0 }
 0x150   :  { %838 = vmatprep.subr.bf16.mxu1 %v935_v0 }
 0x151   :  { %v496_v23 = vpop.permute.xlu0 %495 }
 0x156   :  { %829 = vmatmul.mubr.msk.bf16.vlgmr.msra.gmra.mxu1 %vm101_vm2, %v232_v15 }
 0x157   :  { %839 = vmatpush3.bf16.xpose.msra.mxu1 %v371_v18  ;;  %840 = vmatprep.mubr.msk.bf16.mxu1 %vm936_vm0, %v935_v0 }
 0x158   :  { %850 = vmatprep.subr.bf16.mxu1 %v935_v0 }
 0x15e   :  { %841 = vmatmul.mubr.msk.bf16.vlgmr.msra.gmra.mxu1 %vm101_vm2, %v364_v20 }
 0x15f   :  { %851 = vmatpush3.bf16.xpose.msra.mxu1 %v503_v21  ;;  %852 = vmatprep.mubr.msk.bf16.mxu1 %vm936_vm0, %v935_v0 }
 0x160   :  { %862 = vmatprep.subr.bf16.mxu1 %v935_v0 }
 0x166   :  { %853 = vmatmul.mubr.msk.bf16.vlgmr.msra.gmra.mxu1 %vm101_vm2, %v496_v23 }
 0x167   :  { %863 = vmatpush3.bf16.msra.mxu1 %v896_v22  ;;  %866 = vmatprep.mubr.msk.bf16.mxu1 %vm936_vm0, %v935_v0 }
 0x168   :  { %864 = vmatprep.subr.bf16.mxu1 %v935_v0 }
 0x16b   :  { %865 = vmatpush3.bf16.msra.mxu1 %v899_v24 }
 0x20e   :  { %v142_v25 = vpop.f32.mrf.mxu1 }
 0x20f   :  { %v149_v27 = vmul.f32 0.35355338, %v142_v25 }
 0x210   :  { %v818_v28 = vpop.f32.mrf.mxu1 }
 0x211   :  { %v153_v29 = vadd.f32 %v151_v26, %v149_v27 }
 0x212   :  { %v145_v30 = vpop.f32.mrf.mxu1 }
 0x213   :  { %v150_v32 = vmul.f32 0.35355338, %v145_v30  ;;  %v156_v33 = vsel %vm155_vm3, %v153_v29, -inf }
 0x214   :  { %157 = vmax.xlane.f32.xlu1 %v156_v33  ;;  %v819_v34 = vpop.f32.mrf.mxu1 }
 0x215   :  { %v154_v35 = vadd.f32 %v152_v31, %v150_v32 }
 0x216   :  { %v275_v36 = vpop.f32.mrf.mxu1 }
 0x217   :  { %v282_v38 = vmul.f32 0.35355338, %v275_v36  ;;  %v159_v39 = vsel %vm155_vm3, %v154_v35, -inf }
 0x218   :  { %160 = vmax.xlane.f32.xlu0 %v159_v39  ;;  %v830_v40 = vpop.f32.mrf.mxu1 }
 0x219   :  { %v287_v41 = vadd.f32 %v764_v37, %v282_v38 }
 0x21a   :  { %v278_v42 = vpop.f32.mrf.mxu1 }
 0x21b   :  { %v283_v44 = vmul.f32 0.35355338, %v278_v42  ;;  %v289_v45 = vsel %vm155_vm3, %v287_v41, -inf }
 0x21c   :  { %290 = vmax.xlane.f32.xlu0 %v289_v45  ;;  %v831_v46 = vpop.f32.mrf.mxu1 }
 0x21d   :  { %v288_v47 = vadd.f32 %v765_v43, %v283_v44 }
 0x21e   :  { %v407_v48 = vpop.f32.mrf.mxu1 }
 0x21f   :  { %v414_v50 = vmul.f32 0.35355338, %v407_v48  ;;  %v292_v51 = vsel %vm155_vm3, %v288_v47, -inf }
 0x220   :  { %293 = vmax.xlane.f32.xlu1 %v292_v51  ;;  %v842_v52 = vpop.f32.mrf.mxu1 }
 0x221   :  { %v419_v53 = vadd.f32 %v768_v49, %v414_v50 }
 0x222   :  { %v410_v54 = vpop.f32.mrf.mxu1 }
 0x223   :  { %v415_v56 = vmul.f32 0.35355338, %v410_v54  ;;  %v421_v57 = vsel %vm155_vm3, %v419_v53, -inf }
 0x224   :  { %422 = vmax.xlane.f32.xlu0 %v421_v57  ;;  %v843_v58 = vpop.f32.mrf.mxu1 }
 0x225   :  { %v420_v59 = vadd.f32 %v769_v55, %v415_v56 }
 0x226   :  { %v539_v60 = vpop.f32.mrf.mxu1 }
 0x227   :  { %v546_v62 = vmul.f32 0.35355338, %v539_v60  ;;  %v424_v63 = vsel %vm155_vm3, %v420_v59, -inf }
 0x228   :  { %425 = vmax.xlane.f32.xlu1 %v424_v63  ;;  %v854_v1 = vpop.f32.mrf.mxu1 }
 0x229   :  { %v551_v2 = vadd.f32 %v772_v61, %v546_v62 }
 0x22a   :  { %v542_v3 = vpop.f32.mrf.mxu1 }
 0x22b   :  { %v547_v5 = vmul.f32 0.35355338, %v542_v3  ;;  %v553_v6 = vsel %vm155_vm3, %v551_v2, -inf }
 0x22c   :  { %554 = vmax.xlane.f32.xlu0 %v553_v6  ;;  %v855_v7 = vpop.f32.mrf.mxu1 }
 0x22d   :  { %v552_v8 = vadd.f32 %v773_v4, %v547_v5 }
 0x22f   :  { %v556_v9 = vsel %vm155_vm3, %v552_v8, -inf }
 0x230   :  { %557 = vmax.xlane.f32.xlu1 %v556_v9 }
 0x29d   :  { %v158_v10 = vpop.xlane.xlu1 %157 }
 0x29e   :  { %v162_v12 = vsub.f32 %v153_v29, %v158_v10 }
 0x2a0   :  { %v164_v13 = vmul.f32 1.442695, %v162_v12 }
 0x2a1   :  { %v161_v14 = vpop.xlane.xlu0 %160 }
 0x2a2   :  { %903 = vpow2.f32 %v164_v13  ;;  %v163_v15 = vsub.f32 %v154_v35, %v161_v14 }
 0x2a4   :  { %v166_v16 = vmul.f32 1.442695, %v163_v15 }
 0x2a5   :  { %v291_v17 = vpop.xlane.xlu0 %290 }
 0x2a6   :  { %905 = vpow2.f32 %v166_v16  ;;  %v295_v18 = vsub.f32 %v287_v41, %v291_v17 }
 0x2a8   :  { %v297_v19 = vmul.f32 1.442695, %v295_v18 }
 0x2a9   :  { %v294_v26 = vpop.xlane.xlu1 %293 }
 0x2aa   :  { %907 = vpow2.f32 %v297_v19  ;;  %v296_v27 = vsub.f32 %v288_v47, %v294_v26 }
 0x2ac   :  { %v299_v31 = vmul.f32 1.442695, %v296_v27 }
 0x2ad   :  { %v423_v28 = vpop.xlane.xlu0 %422 }
 0x2ae   :  { %v427_v30 = vsub.f32 %v419_v53, %v423_v28  ;;  %909 = vpow2.f32 %v299_v31 }
 0x2af   :  { %v904_v20 = vpop.eup %903 }
 0x2b0   :  { %v168_v21 = vsel %vm155_vm3, %v904_v20, 0.0  ;;  %v429_v35 = vmul.f32 1.442695, %v427_v30 }
 0x2b1   :  { %169 = vadd.xlane.f32.xlu0 %v168_v21  ;;  %v426_v29 = vpop.xlane.xlu1 %425 }
 0x2b2   :  { %v428_v32 = vsub.f32 %v420_v59, %v426_v29  ;;  %911 = vpow2.f32 %v429_v35 }
 0x2b3   :  { %v906_v22 = vpop.eup %905 }
 0x2b4   :  { %v171_v23 = vsel %vm155_vm3, %v906_v22, 0.0  ;;  %v431_v37 = vmul.f32 1.442695, %v428_v32 }
 0x2b5   :  { %172 = vadd.xlane.f32.xlu1 %v171_v23  ;;  %v555_v33 = vpop.xlane.xlu0 %554 }
 0x2b6   :  { %v559_v36 = vsub.f32 %v551_v2, %v555_v33  ;;  %913 = vpow2.f32 %v431_v37 }
 0x2b7   :  { %v1070_v24 = vpop.eup %907 }
 0x2b8   :  { %v301_v25 = vsel %vm155_vm3, %v1070_v24, 0.0  ;;  %v561_v39 = vmul.f32 1.442695, %v559_v36 }
 0x2b9   :  { %302 = vadd.xlane.f32.xlu0 %v301_v25  ;;  %v558_v34 = vpop.xlane.xlu1 %557 }
 0x2ba   :  { %v560_v38 = vsub.f32 %v552_v8, %v558_v34  ;;  %915 = vpow2.f32 %v561_v39 }
 0x2bb   :  { %v910_v41 = vpop.eup %909 }
 0x2bc   :  { %v563_v40 = vmul.f32 1.442695, %v560_v38  ;;  %v304_v43 = vsel %vm155_vm3, %v910_v41, 0.0 }
 0x2be   :  { %917 = vpow2.f32 %v563_v40 }
 0x2bf   :  { %v912_v42 = vpop.eup %911 }
 0x2c0   :  { %v433_v47 = vsel %vm155_vm3, %v912_v42, 0.0 }
 0x2c3   :  { %v914_v44 = vpop.eup %913 }
 0x2c4   :  { %v436_v46 = vsel %vm155_vm3, %v914_v44, 0.0 }
 0x2c6   :  { %312 = vrot.lane.b32.xlu1 %v999_v11, %s944_s1 }
 0x2c7   :  { %v1077_v45 = vpop.eup %915 }
 0x2c8   :  { %v565_v50 = vsel %vm155_vm3, %v1077_v45, 0.0 }
 0x2cb   :  { %v918_v48 = vpop.eup %917 }
 0x2cc   :  { %v568_v49 = vsel %vm155_vm3, %v918_v48, 0.0 }
 0x2cf   :  { %179 = vrot.lane.b32.xlu0 %v999_v11, %s945_s22 }
 0x2ea   :  { %305 = vadd.xlane.f32.xlu1 %v304_v43 }
 0x2ee   :  { %437 = vadd.xlane.f32.xlu1 %v436_v46  ;;  %434 = vadd.xlane.f32.xlu0 %v433_v47  ;;  %v902_v46 = vld [vmem:[%s1126_s2 + $0x8] ss:$12 sps:$4 sm:$0xff]  }
 0x2f2   :  { %569 = vadd.xlane.f32.xlu1 %v568_v49  ;;  %566 = vadd.xlane.f32.xlu0 %v565_v50 }
 0x303   :  { %444 = vrot.lane.b32.xlu1 %v999_v11, %s946_s0 }
 0x308   :  { %576 = vrot.lane.b32.xlu0 %v999_v11, %s947_s23 }
 0x33a   :  { %v170_v51 = vpop.xlane.xlu0 %169 }
 0x33b   :  { %919 = vrcp.f32 %v170_v51 }
 0x33e   :  { %v173_v52 = vpop.xlane.xlu1 %172 }
 0x33f   :  { %921 = vrcp.f32 %v173_v52 }
 0x342   :  { %v303_v53 = vpop.xlane.xlu0 %302  ;;  %v313_v60 = vpop.permute.xlu1 %312 }
 0x343   :  { %923 = vrcp.f32 %v303_v53 }
 0x346   :  { %v180_v54 = vpop.permute.xlu0 %179 }
 0x347   :  { %821 = vmatpush3.bf16.msra.mxu0 %v180_v54 }
 0x348   :  { %832 = vmatprep.subr.bf16.mxu0 %v935_v0  ;;  %v920_v55 = vpop.eup %919 }
 0x349   :  { %v176_v57 = vmul.f32 %v920_v55, %v904_v20 }
 0x34c   :  { %v922_v56 = vpop.eup %921 }
 0x34d   :  { %v177_v58 = vmul.f32 %v922_v56, %v906_v22 }
 0x34f   :  { %v178_v59 = vpack.c.bf16 %v177_v58, %v176_v57 }
 0x350   :  { %v924_v2 = vpop.eup %923 }
 0x351   :  { %823 = vmatmul.mubr.msk.bf16.vlgmr.msra.gmra.mxu0 %vm155_vm3, %v178_v59  ;;  %v309_v4 = vmul.f32 %v924_v2, %v1070_v24 }
 0x352   :  { %833 = vmatpush3.bf16.msra.mxu0 %v313_v60  ;;  %834 = vmatprep.mubr.msk.bf16.mxu0 %vm936_vm0, %v935_v0 }
 0x353   :  { %844 = vmatprep.subr.bf16.mxu0 %v935_v0 }
 0x373   :  { %v306_v11 = vpop.xlane.xlu1 %305 }
 0x374   :  { %925 = vrcp.f32 %v306_v11 }
 0x377   :  { %v438_v61 = vpop.xlane.xlu1 %437  ;;  %v435_v62 = vpop.xlane.xlu0 %434 }
 0x378   :  { %927 = vrcp.f32 %v438_v61 }
 0x379   :  { %929 = vrcp.f32 %v435_v62 }
 0x37b   :  { %v570_v63 = vpop.xlane.xlu1 %569  ;;  %v567_v1 = vpop.xlane.xlu0 %566 }
 0x37c   :  { %931 = vrcp.f32 %v570_v63 }
 0x37d   :  { %933 = vrcp.f32 %v567_v1 }
 0x37f   :  { %v445_v9 = vpop.permute.xlu1 %444  ;;  %v577_v16 = vpop.permute.xlu0 %576 }
 0x381   :  { %v926_v3 = vpop.eup %925 }
 0x382   :  { %v310_v5 = vmul.f32 %v926_v3, %v910_v41 }
 0x384   :  { %v311_v6 = vpack.c.bf16 %v310_v5, %v309_v4 }
 0x385   :  { %v928_v7 = vpop.eup %927 }
 0x386   :  { %v930_v8 = vpop.eup %929  ;;  %835 = vmatmul.mubr.msk.bf16.vlgmr.msra.gmra.mxu0 %vm155_vm3, %v311_v6  ;;  %v442_v12 = vmul.f32 %v928_v7, %v914_v44  ;;  %v901_v44 = vld [vmem:[%s1126_s2 + $0x20] ss:$12 sps:$4 sm:$0xff]  }
 0x387   :  { %845 = vmatpush3.bf16.msra.mxu0 %v445_v9  ;;  %846 = vmatprep.mubr.msk.bf16.mxu0 %vm936_vm0, %v935_v0  ;;  %v441_v10 = vmul.f32 %v930_v8, %v912_v42 }
 0x388   :  { %856 = vmatprep.subr.bf16.mxu0 %v935_v0 }
 0x389   :  { %v932_v13 = vpop.eup %931  ;;  %v443_v14 = vpack.c.bf16 %v442_v12, %v441_v10 }
 0x38a   :  { %v934_v15 = vpop.eup %933  ;;  %v574_v18 = vmul.f32 %v932_v13, %v918_v48 }
 0x38b   :  { %v573_v17 = vmul.f32 %v934_v15, %v1077_v45 }
 0x38d   :  { %v575_v19 = vpack.c.bf16 %v574_v18, %v573_v17 }
 0x38e   :  { %847 = vmatmul.mubr.msk.bf16.vlgmr.msra.gmra.mxu0 %vm155_vm3, %v443_v14 }
 0x38f   :  { %857 = vmatpush3.bf16.msra.mxu0 %v577_v16  ;;  %858 = vmatprep.mubr.msk.bf16.mxu0 %vm936_vm0, %v935_v0 }
 0x390   :  { %870 = vmatprep.subr.bf16.mxu0 %v935_v0 }
 0x396   :  { %859 = vmatmul.mubr.msk.bf16.vlgmr.msra.gmra.mxu0 %vm155_vm3, %v575_v19 }
 0x397   :  { %874 = vmatprep.mubr.msk.bf16.mxu0 %vm936_vm0, %v935_v0  ;;  %871 = vmatpush3.bf16.msra.mxu0 %v901_v44 }
 0x398   :  { %872 = vmatprep.subr.bf16.mxu0 %v935_v0 }
 0x39b   :  { %873 = vmatpush3.bf16.msra.mxu0 %v902_v46 }
 0x411   :  { %v219_v20 = vpop.f32.mrf.mxu0 }
 0x412   :  { %v226_v23 = vsel %vm101_vm2, %v219_v20, 0.0 }
 0x413   :  { %v824_v21 = vpop.f32.mrf.mxu0 }
 0x415   :  { %v222_v22 = vpop.f32.mrf.mxu0 }
 0x416   :  { %v227_v24 = vsel %vm101_vm2, %v222_v22, 0.0 }
 0x417   :  { %v228_v25 = vadd.f32 %v227_v24, %v226_v23  ;;  %v825_v26 = vpop.f32.mrf.mxu0 }
 0x419   :  { %v230_v54 = vmul.f32 0.5, %v228_v25 }
 0x446   :  { %v352_v27 = vpop.f32.mrf.mxu0 }
 0x447   :  { %v359_v30 = vsel %vm101_vm2, %v352_v27, 0.0 }
 0x448   :  { %v836_v28 = vpop.f32.mrf.mxu0 }
 0x44a   :  { %v355_v29 = vpop.f32.mrf.mxu0 }
 0x44b   :  { %v360_v31 = vsel %vm101_vm2, %v355_v29, 0.0 }
 0x44c   :  { %v361_v32 = vadd.f32 %v360_v31, %v359_v30  ;;  %v837_v33 = vpop.f32.mrf.mxu0 }
 0x44e   :  { %v362_v34 = vmul.f32 0.5, %v361_v32  ;;  %v484_v35 = vpop.f32.mrf.mxu0 }
 0x44f   :  { %v491_v38 = vsel %vm101_vm2, %v484_v35, 0.0 }
 0x450   :  { %628 = vrot.lane.b32.xlu1 %v362_v34, %s948_s24  ;;  %v848_v36 = vpop.f32.mrf.mxu0 }
 0x452   :  { %v487_v37 = vpop.f32.mrf.mxu0 }
 0x453   :  { %v492_v39 = vsel %vm101_vm2, %v487_v37, 0.0 }
 0x454   :  { %v493_v40 = vadd.f32 %v492_v39, %v491_v38  ;;  %v849_v41 = vpop.f32.mrf.mxu0 }
 0x456   :  { %v494_v42 = vmul.f32 0.5, %v493_v40  ;;  %v616_v43 = vpop.f32.mrf.mxu0 }
 0x457   :  { %v623_v48 = vsel %vm101_vm2, %v616_v43, 0.0 }
 0x458   :  { %632 = vrot.lane.b32.xlu0 %v494_v42, %s949_s26  ;;  %v860_v45 = vpop.f32.mrf.mxu0 }
 0x45a   :  { %v619_v47 = vpop.f32.mrf.mxu0 }
 0x45b   :  { %v624_v49 = vsel %vm101_vm2, %v619_v47, 0.0 }
 0x45c   :  { %v625_v50 = vadd.f32 %v624_v49, %v623_v48  ;;  %v861_v51 = vpop.f32.mrf.mxu0 }
 0x45e   :  { %v626_v52 = vmul.f32 0.5, %v625_v50 }
 0x460   :  { %636 = vrot.lane.b32.xlu1 %v626_v52, %s950_s29 }
 0x4c2   :  { %v629_v53 = vpop.permute.xlu1 %628 }
 0x4c3   :  { %v639_v56 = vsel %vm101_vm2, %v230_v54, %v629_v53 }
 0x4ca   :  { %v633_v55 = vpop.permute.xlu0 %632 }
 0x4cb   :  { %v640_v57 = vsel %vm155_vm3, %v639_v56, %v633_v55 }
 0x4d2   :  { %v637_v0 = vpop.permute.xlu1 %636 }
 0x4d3   :  { %v642_v58 = vsel %vm641_vm4, %v640_v57, %v637_v0 }
 0x4d4   :  { %v643_v59 = vpack.c.bf16 %v642_v58, %v642_v58 }
 0x4d6   :  { %867 = vmatmul.mubr.msk.bf16.vlgmr.msra.gmra.mxu1 %vm52_vm1, %v643_v59 }
 0x596   :  { %v689_v60 = vpop.f32.mrf.mxu1 }
 0x597   :  { %v695_v11 = vpack.c.bf16 %v689_v60, %v689_v60 }
 0x598   :  { %v868_v61 = vpop.f32.mrf.mxu1 }
 0x599   :  { %875 = vmatmul.mubr.msk.bf16.vlgmr.msra.gmra.mxu0 %vm52_vm1, %v695_v11 }
 0x59a   :  { %v692_v62 = vpop.f32.mrf.mxu1 }
 0x59c   :  { %v869_v63 = vpop.f32.mrf.mxu1 }
 0x659   :  { %v745_v1 = vpop.f32.mrf.mxu0 }
 0x65a   :  { %751 = vst [vmem:[%s1130_s4] sm:$0xff] %v745_v1 }
 0x65b   :  { %v876_v2 = vpop.f32.mrf.mxu0 }
 0x65d   :  { %v748_v3 = vpop.f32.mrf.mxu0 }
 0x65f   :  { %v877_v4 = vpop.f32.mrf.mxu0 }

</bundles_post_ra>
